<compile_context>
chip_gen: v5e
topology: v5e:2x2
jax: 0.10.0
libtpu: 0.0.40
codegen_flags: <defaults>
</compile_context>

<pallas_src>
import functools

import jax
import jax.numpy as jnp
from jax import lax
from jax.experimental import pallas as pl
from jax.experimental.pallas import tpu as pltpu

IN_FEATURES = 784
HIDDEN = 100
OUT = 10

K_PAD = 896        # round_up(784, 128)
N_PAD = 128        # padded hidden / logit lane width (one full lane group)
TB_DEFAULT = 512   # batch tile for large B (well under VMEM on v5e/v6e/v7x)


def _round_up(x, m):
    return (x + m - 1) // m * m


def _mlp_logsoftmax_kernel(x_ref, w1t_ref, w2t_ref, w3t_ref, o_ref):
    # x_ref: (TB, 896) bf16; w1t: (896, 128), w2t/w3t: (128, 128) bf16
    # (VMEM-resident across grid steps).  o_ref: (TB, 128) f32 lane-dense tile.
    x = x_ref[...]
    h1 = jnp.dot(x, w1t_ref[...], preferred_element_type=jnp.float32)
    h1 = jnp.maximum(h1, 0.0).astype(jnp.bfloat16)
    h2 = jnp.dot(h1, w2t_ref[...], preferred_element_type=jnp.float32)
    h2 = jnp.maximum(h2, 0.0).astype(jnp.bfloat16)
    logits = jnp.dot(h2, w3t_ref[...], preferred_element_type=jnp.float32)

    # Padded logit lanes (>= OUT) are exact zeros (zero-padded weights);
    # mask them to -inf so max / logsumexp only see the real 10 classes.
    lane = lax.broadcasted_iota(jnp.int32, logits.shape, 1)
    logits = jnp.where(lane < OUT, logits, -jnp.inf)

    m = jnp.max(logits, axis=-1, keepdims=True)
    s = logits - m
    lse = jnp.log(jnp.sum(jnp.exp(s), axis=-1, keepdims=True))
    o_ref[...] = s - lse  # full (TB, 128) unmasked store; padded lanes = -inf


def prepare_params(w1, w2, w3):
    """One-time weight prep (kept OUT of the per-call hot path):
    transpose nn.Linear (out, in) -> (in, out), zero-pad to 128-aligned MXU
    tiles, cast to bf16."""
    def pad_t(w, k_pad, n_pad):
        wt = w.T
        k, n = wt.shape
        return jnp.pad(wt, ((0, k_pad - k), (0, n_pad - n))).astype(jnp.bfloat16)

    w1t = pad_t(w1, K_PAD, N_PAD)   # (896, 128)
    w2t = pad_t(w2, N_PAD, N_PAD)   # (128, 128)
    w3t = pad_t(w3, N_PAD, N_PAD)   # (128, 128)
    return w1t, w2t, w3t


@functools.partial(jax.jit, static_argnames=("block_b",))
def basic_net_forward(x_nchw, w1t, w2t, w3t, *, block_b=TB_DEFAULT):
    """x_nchw: (B, 1, 28, 28) f32.  w1t/w2t/w3t: padded bf16 weights from
    prepare_params().  Returns (B, 10) f32 log-probabilities."""
    B = x_nchw.shape[0]
    x_flat = x_nchw.reshape(B, -1)                      # torch.flatten(x, 1)
    assert x_flat.shape[1] == IN_FEATURES

    # Batch tile: multiple of 16 (bf16 sublane packing); cap at block_b.
    tb = block_b if B > block_b else max(16, _round_up(B, 16))
    bp = _round_up(B, tb)

    # Cast to bf16 first (fewer bytes to pad), then pad K to 896 and batch to
    # a tile multiple (single fused XLA convert+pad).
    x_p = jnp.pad(
        x_flat.astype(jnp.bfloat16),
        ((0, bp - B), (0, K_PAD - IN_FEATURES)),
    )

    out_padded = pl.pallas_call(
        _mlp_logsoftmax_kernel,
        out_shape=jax.ShapeDtypeStruct((bp, N_PAD), jnp.float32),
        grid_spec=pltpu.PrefetchScalarGridSpec(
            num_scalar_prefetch=0,
            grid=(bp // tb,),
            in_specs=[
                # x: one batch tile per grid step (double-buffered by Pallas).
                pl.BlockSpec((tb, K_PAD), lambda i: (i, 0)),
                # Weights: constant block index -> stay VMEM-resident.
                pl.BlockSpec((K_PAD, N_PAD), lambda i: (0, 0)),
                pl.BlockSpec((N_PAD, N_PAD), lambda i: (0, 0)),
                pl.BlockSpec((N_PAD, N_PAD), lambda i: (0, 0)),
            ],
            out_specs=pl.BlockSpec((tb, N_PAD), lambda i: (i, 0)),
        ),
        compiler_params=pltpu.CompilerParams(
            # Independent batch tiles: shard across both v7x TensorCores.
            dimension_semantics=("parallel",),
        ),
    )(x_p, w1t, w2t, w3t)

    return out_padded[:B, :OUT]


def _init_linear_weight(key, out_features, in_features):
    # Matches nn.Linear default init: U(-1/sqrt(fan_in), 1/sqrt(fan_in)).
    bound = 1.0 / jnp.sqrt(jnp.float32(in_features))
    return jax.random.uniform(
        key, (out_features, in_features), dtype=jnp.float32,
        minval=-bound, maxval=bound)


def _reference_forward(x_nchw, w1, w2, w3):
    x = x_nchw.reshape(x_nchw.shape[0], -1)
    h1 = jnp.maximum(x @ w1.T, 0.0)
    h2 = jnp.maximum(h1 @ w2.T, 0.0)
    logits = h2 @ w3.T
    return jax.nn.log_softmax(logits, axis=1)


if __name__ == "__main__":
    key = jax.random.PRNGKey(0)
    kx, k1, k2, k3 = jax.random.split(key, 4)

    B = 2
    x = jax.random.normal(kx, (B, 1, 28, 28), dtype=jnp.float32)
    w1 = _init_linear_weight(k1, HIDDEN, IN_FEATURES)
    w2 = _init_linear_weight(k2, HIDDEN, HIDDEN)
    w3 = _init_linear_weight(k3, OUT, HIDDEN)

    # One-time weight prep outside the hot path.
    w1t, w2t, w3t = jax.block_until_ready(prepare_params(w1, w2, w3))

    out = basic_net_forward(x, w1t, w2t, w3t)
    out = jax.block_until_ready(out)

    ref = _reference_forward(x, w1, w2, w3)
    assert out.shape == (B, 10)
    # bf16 matmul inputs (f32 accumulation) -> loosened tolerance vs f32 ref.
    assert jnp.allclose(out, ref, atol=5e-2, rtol=5e-2)
    # log_softmax rows must exponentiate-sum to 1.
    assert jnp.allclose(jnp.sum(jnp.exp(out), axis=-1), 1.0, atol=1e-3)
    print("KERNEL_OK")
</pallas_src>

<mosaic_0001>
module attributes {stable_mosaic.version = 11 : i64} {
  func.func @_mlp_logsoftmax_kernel(%arg0: i32, %arg1: memref<16x896xbf16, #tpu.memory_space<vmem>>, %arg2: memref<896x128xbf16, #tpu.memory_space<vmem>>, %arg3: memref<128x128xbf16, #tpu.memory_space<vmem>>, %arg4: memref<128x128xbf16, #tpu.memory_space<vmem>>, %arg5: memref<16x128xf32, #tpu.memory_space<vmem>>) attributes {dimension_semantics = [#tpu.dimension_semantics<parallel>], iteration_bounds = array<i64: 1>, scalar_prefetch = 0 : i64, scratch_operands = 0 : i64, tpu.core_type = #tpu.core_type<tc>, window_params = [{transform_indices = @transform_0, window_bounds = array<i64: 16, 896>}, {pipeline_mode = #tpu.pipeline_mode<synchronous>, transform_indices = @transform_1, window_bounds = array<i64: 896, 128>}, {pipeline_mode = #tpu.pipeline_mode<synchronous>, transform_indices = @transform_2, window_bounds = array<i64: 128, 128>}, {pipeline_mode = #tpu.pipeline_mode<synchronous>, transform_indices = @transform_3, window_bounds = array<i64: 128, 128>}, {transform_indices = @transform_4, window_bounds = array<i64: 16, 128>}]} {
    %c0 = arith.constant 0 : index
    %c0_0 = arith.constant 0 : index
    %0 = vector.load %arg1[%c0, %c0_0] : memref<16x896xbf16, #tpu.memory_space<vmem>>, vector<16x896xbf16>
    %c0_1 = arith.constant 0 : index
    %c0_2 = arith.constant 0 : index
    %1 = vector.load %arg2[%c0_1, %c0_2] : memref<896x128xbf16, #tpu.memory_space<vmem>>, vector<896x128xbf16>
    %cst = arith.constant dense<0.000000e+00> : vector<16x128xf32>
    %2 = tpu.matmul %0, %1, %cst {dimension_numbers = #tpu.dot_dimension_numbers<[1], [0], [0], [1], [0, 0, 1, 1], [], []>} : vector<16x896xbf16>, vector<896x128xbf16>, vector<16x128xf32> -> vector<16x128xf32>
    %cst_3 = arith.constant 0.000000e+00 : f32
    %3 = vector.broadcast %cst_3 : f32 to vector<16x128xf32>
    %4 = arith.maximumf %2, %3 : vector<16x128xf32>
    %5 = arith.truncf %4 : vector<16x128xf32> to vector<16x128xbf16>
    %c0_4 = arith.constant 0 : index
    %c0_5 = arith.constant 0 : index
    %6 = vector.load %arg3[%c0_4, %c0_5] : memref<128x128xbf16, #tpu.memory_space<vmem>>, vector<128x128xbf16>
    %cst_6 = arith.constant dense<0.000000e+00> : vector<16x128xf32>
    %7 = tpu.matmul %5, %6, %cst_6 {dimension_numbers = #tpu.dot_dimension_numbers<[1], [0], [0], [1], [0, 0, 1, 1], [], []>} : vector<16x128xbf16>, vector<128x128xbf16>, vector<16x128xf32> -> vector<16x128xf32>
    %cst_7 = arith.constant 0.000000e+00 : f32
    %8 = vector.broadcast %cst_7 : f32 to vector<16x128xf32>
    %9 = arith.maximumf %7, %8 : vector<16x128xf32>
    %10 = arith.truncf %9 : vector<16x128xf32> to vector<16x128xbf16>
    %c0_8 = arith.constant 0 : index
    %c0_9 = arith.constant 0 : index
    %11 = vector.load %arg4[%c0_8, %c0_9] : memref<128x128xbf16, #tpu.memory_space<vmem>>, vector<128x128xbf16>
    %cst_10 = arith.constant dense<0.000000e+00> : vector<16x128xf32>
    %12 = tpu.matmul %10, %11, %cst_10 {dimension_numbers = #tpu.dot_dimension_numbers<[1], [0], [0], [1], [0, 0, 1, 1], [], []>} : vector<16x128xbf16>, vector<128x128xbf16>, vector<16x128xf32> -> vector<16x128xf32>
    %13 = tpu.iota {dimensions = array<i32: 1>} : vector<16x128xi32>
    %c10_i32 = arith.constant 10 : i32
    %14 = vector.broadcast %c10_i32 : i32 to vector<16x128xi32>
    %15 = arith.cmpi slt, %13, %14 : vector<16x128xi32>
    %cst_11 = arith.constant 0xFF800000 : f32
    %16 = vector.broadcast %cst_11 : f32 to vector<16x128xf32>
    %17 = arith.select %15, %12, %16 : vector<16x128xi1>, vector<16x128xf32>
    %cst_12 = arith.constant dense<0xFF800000> : vector<16xf32>
    %18 = vector.multi_reduction <maximumf>, %17, %cst_12 [1] : vector<16x128xf32> to vector<16xf32>
    %19 = vector.shape_cast %18 : vector<16xf32> to vector<16x1xf32>
    %20 = vector.broadcast %19 : vector<16x1xf32> to vector<16x128xf32>
    %21 = arith.subf %17, %20 : vector<16x128xf32>
    %22 = math.exp %21 : vector<16x128xf32>
    %cst_13 = arith.constant dense<0.000000e+00> : vector<16xf32>
    %23 = vector.multi_reduction <add>, %22, %cst_13 [1] : vector<16x128xf32> to vector<16xf32>
    %24 = vector.shape_cast %23 : vector<16xf32> to vector<16x1xf32>
    %25 = math.log %24 : vector<16x1xf32>
    %26 = vector.broadcast %25 : vector<16x1xf32> to vector<16x128xf32>
    %27 = arith.subf %21, %26 : vector<16x128xf32>
    %c0_14 = arith.constant 0 : index
    %c0_15 = arith.constant 0 : index
    %28 = vector.load %arg5[%c0_14, %c0_15] : memref<16x128xf32, #tpu.memory_space<vmem>>, vector<16x128xf32>
    tpu.vector_store %arg5[%c0_14, %c0_15], %27 {strides = array<i32>} : memref<16x128xf32, #tpu.memory_space<vmem>>, vector<16x128xf32>,
    return
  }
  func.func @transform_0(%arg0: i32) -> (i32, i32) {
    %c0_i32 = arith.constant 0 : i32
    %c0_i32_0 = arith.constant 0 : i32
    return %arg0, %c0_i32 : i32, i32
  }
  func.func @transform_1(%arg0: i32) -> (i32, i32) {
    %c0_i32 = arith.constant 0 : i32
    %c0_i32_0 = arith.constant 0 : i32
    %c0_i32_1 = arith.constant 0 : i32
    return %c0_i32, %c0_i32_0 : i32, i32
  }
  func.func @transform_2(%arg0: i32) -> (i32, i32) {
    %c0_i32 = arith.constant 0 : i32
    %c0_i32_0 = arith.constant 0 : i32
    %c0_i32_1 = arith.constant 0 : i32
    return %c0_i32, %c0_i32_0 : i32, i32
  }
  func.func @transform_3(%arg0: i32) -> (i32, i32) {
    %c0_i32 = arith.constant 0 : i32
    %c0_i32_0 = arith.constant 0 : i32
    %c0_i32_1 = arith.constant 0 : i32
    return %c0_i32, %c0_i32_0 : i32, i32
  }
  func.func @transform_4(%arg0: i32) -> (i32, i32) {
    %c0_i32 = arith.constant 0 : i32
    %c0_i32_0 = arith.constant 0 : i32
    return %arg0, %c0_i32 : i32, i32
  }
}

</mosaic_0001>

<bundles_post_ra>
// kernel: basic_net_forward.1
= control target key start
LH: loop header
LB: loop body
LE: loop exit
PB: predicated region body
PF: predicated region fallthrough
CT: control target
= control target key end

     0   :  { %9 = vsyncpa [#allocation3], 0  ;;  %s1249_s18 = smov [#allocation2]   ;;  %s1250_s20 = smov 64   ;;  %s1376_s0 = inlined_call_operand.vmem [shape: bf16[16,896], index: 0, kind: input, shape index: {}]   ;;  %s1377_s1 = inlined_call_operand.hbm [shape: bf16[896,128], index: 1, kind: input, shape index: {}]   ;;  %s1378_s2 = inlined_call_operand.vmem [shape: bf16[128,128], index: 2, kind: input, shape index: {}]   ;;  %s1379_s3 = inlined_call_operand.vmem [shape: bf16[128,128], index: 3, kind: input, shape index: {}]   ;;  %s1380_s4 = inlined_call_operand.vmem [shape: f32[16,128], index: 4, kind: output, shape index: {}]  }
   0x1   :  { %s16_s17 = sshll.u32 %s1377_s1, 4  ;;  %s18_s19 = sshll.u32 %s1249_s18, 4  ;;  %s17_s17 = int_to_ptr.hbm [resolvable:$true] %s16_s17  ;;  %s19_s19 = int_to_ptr.vmem [resolvable:$true] %s18_s19 }
   0x2   :  { %s1251_s21 = smov 4  }
   0x3   :  { %24 = dma.hbm_to_vmem [thread:$0]  %s17_s17, 7168, %s19_s19, [#allocation3], %s1250_s20, %s1250_s20, %s1251_s21  }
   0x4   :  { %1247 = dma.done.wait [#allocation3], 7168  }
   0x5   :  { %1248 = vsyncadd [#allocation3], 4294960128  ;;  %v1147_v0 = vld [vmem:[#allocation2 + $0x38] sm:$0xff]  ;;  %v1146_v3 = vld [vmem:[#allocation2 + $0x30] sm:$0xff] }
   0x6   :  { %v1155_v1 = vld [vmem:[#allocation2 + $0x78] sm:$0xff]  ;;  %525 = vmatpush.bf16.msra.mxu0 %v1147_v0  ;;  %v1154_v4 = vld [vmem:[#allocation2 + $0x70] sm:$0xff]  ;;  %v1145_v8 = vld [vmem:[#allocation2 + $0x28] sm:$0xff] }
   0x7   :  { %v1163_v2 = vld [vmem:[#allocation2 + $0xb8] sm:$0xff]  ;;  %539 = vmatpush.bf16.msra.mxu1 %v1155_v1  ;;  %v1162_v6 = vld [vmem:[#allocation2 + $0xb0] sm:$0xff]  ;;  %v1153_v9 = vld [vmem:[#allocation2 + $0x68] sm:$0xff] }
   0x8   :  { %v1171_v5 = vld [vmem:[#allocation2 + $0xf8] sm:$0xff]  ;;  %553 = vmatpush.bf16.msra.mxu2 %v1163_v2  ;;  %v1170_v7 = vld [vmem:[#allocation2 + $0xf0] sm:$0xff]  ;;  %v1161_v10 = vld [vmem:[#allocation2 + $0xa8] sm:$0xff] }
   0x9   :  { %567 = vmatpush.bf16.msra.mxu3 %v1171_v5  ;;  %v1169_v11 = vld [vmem:[#allocation2 + $0xe8] sm:$0xff]  ;;  %v1144_v12 = vld [vmem:[#allocation2 + $0x20] sm:$0xff]  ;;  %v1143_v16 = vld [vmem:[#allocation2 + $0x18] sm:$0xff] }
   0xa   :  { %526 = vmatpush.bf16.msra.mxu0 %v1146_v3  ;;  %v1152_v13 = vld [vmem:[#allocation2 + $0x60] sm:$0xff]  ;;  %v1151_v17 = vld [vmem:[#allocation2 + $0x58] sm:$0xff]  ;;  %v1142_v20 = vld [vmem:[#allocation2 + $0x10] sm:$0xff] }
   0xb   :  { %540 = vmatpush.bf16.msra.mxu1 %v1154_v4  ;;  %v1160_v14 = vld [vmem:[#allocation2 + $0xa0] sm:$0xff]  ;;  %v1159_v18 = vld [vmem:[#allocation2 + $0x98] sm:$0xff]  ;;  %v1150_v21 = vld [vmem:[#allocation2 + $0x50] sm:$0xff] }
   0xc   :  { %554 = vmatpush.bf16.msra.mxu2 %v1162_v6  ;;  %v1168_v15 = vld [vmem:[#allocation2 + $0xe0] sm:$0xff]  ;;  %v1167_v19 = vld [vmem:[#allocation2 + $0xd8] sm:$0xff]  ;;  %v1158_v22 = vld [vmem:[#allocation2 + $0x90] sm:$0xff] }
   0xd   :  { %568 = vmatpush.bf16.msra.mxu3 %v1170_v7  ;;  %v1166_v23 = vld [vmem:[#allocation2 + $0xd0] sm:$0xff]  ;;  %v1141_v24 = vld [vmem:[#allocation2 + $0x8] sm:$0xff]  ;;  %v1140_v27 = vld [vmem:[#allocation2] sm:$0xff] }
   0xe   :  { %527 = vmatpush.bf16.msra.mxu0 %v1145_v8  ;;  %v1149_v25 = vld [vmem:[#allocation2 + $0x48] sm:$0xff]  ;;  %v1148_v29 = vld [vmem:[#allocation2 + $0x40] sm:$0xff]  ;;  %v1179_v31 = vld [vmem:[#allocation2 + $0x138] sm:$0xff] }
   0xf   :  { %541 = vmatpush.bf16.msra.mxu1 %v1153_v9  ;;  %v1157_v26 = vld [vmem:[#allocation2 + $0x88] sm:$0xff]  ;;  %v1156_v30 = vld [vmem:[#allocation2 + $0x80] sm:$0xff]  ;;  %v1136_v34 = vld [vmem:[%s1376_s0 + $0x18] sm:$0xf0] }
  0x10   :  { %555 = vmatpush.bf16.msra.mxu2 %v1161_v10  ;;  %v1165_v28 = vld [vmem:[#allocation2 + $0xc8] sm:$0xff]  ;;  %v819_v33 = vld [vmem:[%s1376_s0] sm:$0xf]  ;;  %v1137_v35 = vld [vmem:[%s1376_s0 + $0x20] sm:$0xf0] }
  0x11   :  { %569 = vmatpush.bf16.msra.mxu3 %v1169_v11  ;;  %v827_v32 = vld [vmem:[%s1376_s0 + $0x8] sm:$0xf]  ;;  %v1133_v36 = vld [vmem:[%s1376_s0 + $0x4] sm:$0xf]  ;;  %v821_v37 = vld [vmem:[%s1376_s0 + $0x1c] sm:$0xf0]  ;;  %v820_v41 = vor.u32 %v1136_v34, %v819_v33 }
  0x12   :  { %528 = vmatpush.bf16.msra.mxu0 %v1144_v12  ;;  %v1187_v38 = vld [vmem:[#allocation2 + $0x178] sm:$0xff]  ;;  %v1164_v40 = vld [vmem:[#allocation2 + $0xc0] sm:$0xff]  ;;  %v828_v42 = vor.u32 %v1137_v35, %v827_v32  ;;  %v1134_v43 = vld [vmem:[%s1376_s0 + $0xc] sm:$0xf]  ;;  %v824_v45 = vor.u32 %v1133_v36, %v821_v37 }
  0x13   :  { %542 = vmatpush.bf16.msra.mxu1 %v1152_v13  ;;  %v1195_v39 = vld [vmem:[#allocation2 + $0x1b8] sm:$0xff]  ;;  %v829_v44 = vld [vmem:[%s1376_s0 + $0x24] sm:$0xf0]  ;;  %v1178_v46 = vld [vmem:[#allocation2 + $0x130] sm:$0xff] }
  0x14   :  { %556 = vmatpush.bf16.msra.mxu2 %v1160_v14  ;;  %v1186_v47 = vld [vmem:[#allocation2 + $0x170] sm:$0xff]  ;;  %v832_v49 = vor.u32 %v1134_v43, %v829_v44  ;;  %v1177_v50 = vld [vmem:[#allocation2 + $0x128] sm:$0xff]  ;;  %v1176_v53 = vld [vmem:[#allocation2 + $0x120] sm:$0xff] }
  0x15   :  { %570 = vmatpush.bf16.msra.mxu3 %v1168_v15  ;;  %v1194_v48 = vld [vmem:[#allocation2 + $0x1b0] sm:$0xff]  ;;  %v1185_v51 = vld [vmem:[#allocation2 + $0x168] sm:$0xff]  ;;  %v1184_v54 = vld [vmem:[#allocation2 + $0x160] sm:$0xff] }
  0x16   :  { %529 = vmatpush.bf16.msra.mxu0 %v1143_v16  ;;  %v1193_v52 = vld [vmem:[#allocation2 + $0x1a8] sm:$0xff]  ;;  %v1192_v55 = vld [vmem:[#allocation2 + $0x1a0] sm:$0xff]  ;;  %v1175_v56 = vld [vmem:[#allocation2 + $0x118] sm:$0xff] }
  0x17   :  { %543 = vmatpush.bf16.msra.mxu1 %v1151_v17  ;;  %v1183_v57 = vld [vmem:[#allocation2 + $0x158] sm:$0xff]  ;;  %v1174_v59 = vld [vmem:[#allocation2 + $0x110] sm:$0xff]  ;;  %v1173_v62 = vld [vmem:[#allocation2 + $0x108] sm:$0xff] }
  0x18   :  { %557 = vmatpush.bf16.msra.mxu2 %v1159_v18  ;;  %v1191_v58 = vld [vmem:[#allocation2 + $0x198] sm:$0xff]  ;;  %v1182_v60 = vld [vmem:[#allocation2 + $0x150] sm:$0xff]  ;;  %v1181_v63 = vld [vmem:[#allocation2 + $0x148] sm:$0xff] }
  0x19   :  { %571 = vmatpush.bf16.msra.mxu3 %v1167_v19  ;;  %v1190_v61 = vld [vmem:[#allocation2 + $0x190] sm:$0xff]  ;;  %v1189_v0 = vld [vmem:[#allocation2 + $0x188] sm:$0xff]  ;;  %v1172_v1 = vld [vmem:[#allocation2 + $0x100] sm:$0xff] }
  0x1a   :  { %530 = vmatpush.bf16.msra.mxu0 %v1142_v20  ;;  %v1180_v2 = vld [vmem:[#allocation2 + $0x140] sm:$0xff]  ;;  %v835_v4 = vld [vmem:[%s1376_s0 + $0x10] sm:$0xf]  ;;  %v1138_v5 = vld [vmem:[%s1376_s0 + $0x28] sm:$0xf0] }
  0x1b   :  { %544 = vmatpush.bf16.msra.mxu1 %v1150_v21  ;;  %v1188_v3 = vld [vmem:[#allocation2 + $0x180] sm:$0xff]  ;;  %v1135_v6 = vld [vmem:[%s1376_s0 + $0x14] sm:$0xf]  ;;  %v837_v7 = vld [vmem:[%s1376_s0 + $0x2c] sm:$0xf0]  ;;  %v836_v10 = vor.u32 %v1138_v5, %v835_v4 }
  0x1c   :  { %558 = vmatpush.bf16.msra.mxu2 %v1158_v22  ;;  %v843_v8 = vld [vmem:[%s1376_s0 + $0x18] sm:$0xf]  ;;  %v1139_v9 = vld [vmem:[%s1376_s0 + $0x30] sm:$0xf0]  ;;  %v840_v11 = vor.u32 %v1135_v6, %v837_v7  ;;  %v1201_v15 = vld [vmem:[%s1378_s2 + $0x28] sm:$0xff] }
  0x1d   :  { %572 = vmatpush.bf16.msra.mxu3 %v1166_v23  ;;  %v844_v12 = vor.u32 %v1139_v9, %v843_v8  ;;  %v1203_v13 = vld [vmem:[%s1378_s2 + $0x38] sm:$0xff]  ;;  %v1202_v14 = vld [vmem:[%s1378_s2 + $0x30] sm:$0xff]  ;;  %v1200_v16 = vld [vmem:[%s1378_s2 + $0x20] sm:$0xff] }
  0x1e   :  { %531 = vmatpush.bf16.msra.mxu0 %v1141_v24  ;;  %v1199_v17 = vld [vmem:[%s1378_s2 + $0x18] sm:$0xff]  ;;  %v1198_v18 = vld [vmem:[%s1378_s2 + $0x10] sm:$0xff]  ;;  %v1197_v19 = vld [vmem:[%s1378_s2 + $0x8] sm:$0xff] }
  0x1f   :  { %545 = vmatpush.bf16.msra.mxu1 %v1149_v25  ;;  %v1196_v22 = vld [vmem:[%s1378_s2] sm:$0xff]  ;;  %v1211_v24 = vld [vmem:[%s1379_s3 + $0x38] sm:$0xff] }
  0x20   :  { %559 = vmatpush.bf16.msra.mxu2 %v1157_v26  ;;  %v1210_v26 = vld [vmem:[%s1379_s3 + $0x30] sm:$0xff]  ;;  %v1208_v34 = vld [vmem:[%s1379_s3 + $0x20] sm:$0xff] }
  0x21   :  { %573 = vmatpush.bf16.msra.mxu3 %v1165_v28 }
  0x22   :  { %532 = vmatpush.bf16.msra.mxu0 %v1140_v27 }
  0x23   :  { %546 = vmatpush.bf16.msra.mxu1 %v1148_v29  ;;  %v1209_v29 = vld [vmem:[%s1379_s3 + $0x28] sm:$0xff] }
  0x24   :  { %560 = vmatpush.bf16.msra.mxu2 %v1156_v30 }
  0x25   :  { %574 = vmatpush.bf16.msra.mxu3 %v1164_v40  ;;  %533 = vmatmul.bf16.vlgmr.msra.gmra.mxu0 %v820_v41 }
  0x26   :  { %581 = vmatpush.bf16.msrb.mxu0 %v1179_v31  ;;  %547 = vmatmul.bf16.vlgmr.msra.gmra.mxu1 %v824_v45 }
  0x27   :  { %595 = vmatpush.bf16.msrb.mxu1 %v1187_v38  ;;  %561 = vmatmul.bf16.vlgmr.msra.gmra.mxu2 %v828_v42  ;;  %v1207_v38 = vld [vmem:[%s1379_s3 + $0x18] sm:$0xff] }
  0x28   :  { %609 = vmatpush.bf16.msrb.mxu2 %v1195_v39  ;;  %575 = vmatmul.bf16.vlgmr.msra.gmra.mxu3 %v832_v49 }
  0x29   :  { %690 = vmatpush.bf16.msrb.mxu3 %v1203_v13 }
  0x2a   :  { %582 = vmatpush.bf16.msrb.mxu0 %v1178_v46 }
  0x2b   :  { %596 = vmatpush.bf16.msrb.mxu1 %v1186_v47 }
  0x2c   :  { %610 = vmatpush.bf16.msrb.mxu2 %v1194_v48 }
  0x2d   :  { %691 = vmatpush.bf16.msrb.mxu3 %v1202_v14 }
  0x2e   :  { %583 = vmatpush.bf16.msrb.mxu0 %v1177_v50 }
  0x2f   :  { %597 = vmatpush.bf16.msrb.mxu1 %v1185_v51 }
  0x30   :  { %611 = vmatpush.bf16.msrb.mxu2 %v1193_v52 }
  0x31   :  { %692 = vmatpush.bf16.msrb.mxu3 %v1201_v15 }
  0x32   :  { %584 = vmatpush.bf16.msrb.mxu0 %v1176_v53 }
  0x33   :  { %598 = vmatpush.bf16.msrb.mxu1 %v1184_v54 }
  0x34   :  { %612 = vmatpush.bf16.msrb.mxu2 %v1192_v55  ;;  %v1206_v55 = vld [vmem:[%s1379_s3 + $0x10] sm:$0xff] }
  0x35   :  { %693 = vmatpush.bf16.msrb.mxu3 %v1200_v16 }
  0x36   :  { %585 = vmatpush.bf16.msrb.mxu0 %v1175_v56  ;;  %v1205_v56 = vld [vmem:[%s1379_s3 + $0x8] sm:$0xff] }
  0x37   :  { %599 = vmatpush.bf16.msrb.mxu1 %v1183_v57  ;;  %v1204_v57 = vld [vmem:[%s1379_s3] sm:$0xff] }
  0x38   :  { %613 = vmatpush.bf16.msrb.mxu2 %v1191_v58 }
  0x39   :  { %694 = vmatpush.bf16.msrb.mxu3 %v1199_v17 }
  0x3a   :  { %586 = vmatpush.bf16.msrb.mxu0 %v1174_v59 }
  0x3b   :  { %600 = vmatpush.bf16.msrb.mxu1 %v1182_v60 }
  0x3c   :  { %614 = vmatpush.bf16.msrb.mxu2 %v1190_v61 }
  0x3d   :  { %695 = vmatpush.bf16.msrb.mxu3 %v1198_v18 }
  0x3e   :  { %587 = vmatpush.bf16.msrb.mxu0 %v1173_v62 }
  0x3f   :  { %601 = vmatpush.bf16.msrb.mxu1 %v1181_v63  ;;  %v785_v63 = vlaneseq }
  0x40   :  { %615 = vmatpush.bf16.msrb.mxu2 %v1189_v0 }
  0x41   :  { %696 = vmatpush.bf16.msrb.mxu3 %v1197_v19  ;;  %v786_v0 = vand.u32 127, %v785_v63 }
  0x42   :  { %588 = vmatpush.bf16.msrb.mxu0 %v1172_v1 }
  0x43   :  { %602 = vmatpush.bf16.msrb.mxu1 %v1180_v2  ;;  %vm787_vm0 = vcmp.lt.s32.totalorder %v786_v0, 10 }
  0x44   :  { %616 = vmatpush.bf16.msrb.mxu2 %v1188_v3 }
  0x45   :  { %589 = vmatmul.bf16.vlgmr.msrb.gmra.mxu0 %v836_v10  ;;  %697 = vmatpush.bf16.msrb.mxu3 %v1196_v22 }
  0x46   :  { %603 = vmatmul.bf16.vlgmr.msrb.gmra.mxu1 %v840_v11  ;;  %771 = vmatpush.bf16.msra.mxu0 %v1211_v24 }
  0x47   :  { %617 = vmatmul.bf16.vlgmr.msrb.gmra.mxu2 %v844_v12 }
  0x4a   :  { %772 = vmatpush.bf16.msra.mxu0 %v1210_v26 }
  0x4e   :  { %773 = vmatpush.bf16.msra.mxu0 %v1209_v29 }
  0x52   :  { %774 = vmatpush.bf16.msra.mxu0 %v1208_v34 }
  0x56   :  { %775 = vmatpush.bf16.msra.mxu0 %v1207_v38 }
  0x5a   :  { %776 = vmatpush.bf16.msra.mxu0 %v1206_v55 }
  0x5e   :  { %777 = vmatpush.bf16.msra.mxu0 %v1205_v56 }
  0x62   :  { %778 = vmatpush.bf16.msra.mxu0 %v1204_v57 }
  0xa2   :  { %v534_v20 = vpop.f32.mrf.mxu0 }
  0xa3   :  { %v548_v21 = vpop.f32.mrf.mxu1 }
  0xa4   :  { %v549_v30 = vadd.f32 %v548_v21, %v534_v20 }
  0xaa   :  { %v562_v23 = vpop.f32.mrf.mxu2  ;;  %v536_v25 = vpop.f32.mrf.mxu0 }
  0xab   :  { %v576_v27 = vpop.f32.mrf.mxu3  ;;  %v550_v28 = vpop.f32.mrf.mxu1  ;;  %v563_v35 = vadd.f32 %v562_v23, %v549_v30 }
  0xac   :  { %v551_v32 = vadd.f32 %v550_v28, %v536_v25 }
  0xad   :  { %v577_v40 = vadd.f32 %v576_v27, %v563_v35 }
  0xb2   :  { %v564_v31 = vpop.f32.mrf.mxu2 }
  0xb3   :  { %v565_v37 = vadd.f32 %v564_v31, %v551_v32  ;;  %v578_v39 = vpop.f32.mrf.mxu3 }
  0xb5   :  { %v579_v42 = vadd.f32 %v578_v39, %v565_v37 }
  0xc2   :  { %v590_v33 = vpop.f32.mrf.mxu0 }
  0xc3   :  { %v604_v36 = vpop.f32.mrf.mxu1  ;;  %v591_v43 = vadd.f32 %v590_v33, %v577_v40 }
  0xc5   :  { %v605_v46 = vadd.f32 %v604_v36, %v591_v43 }
  0xca   :  { %v618_v41 = vpop.f32.mrf.mxu2  ;;  %v592_v44 = vpop.f32.mrf.mxu0 }
  0xcb   :  { %v593_v45 = vadd.f32 %v592_v44, %v579_v42  ;;  %v606_v47 = vpop.f32.mrf.mxu1  ;;  %v619_v48 = vadd.f32 %v618_v41, %v605_v46 }
  0xcd   :  { %v607_v49 = vadd.f32 %v606_v47, %v593_v45  ;;  %v623_v52 = vmax.f32 %v619_v48, 0.0 }
  0xd2   :  { %v620_v50 = vpop.f32.mrf.mxu2 }
  0xd3   :  { %v621_v51 = vadd.f32 %v620_v50, %v607_v49 }
  0xd5   :  { %v624_v53 = vmax.f32 %v621_v51, 0.0 }
  0xd7   :  { %v625_v54 = vpack.c.bf16 %v624_v53, %v623_v52 }
  0xd9   :  { %698 = vmatmul.bf16.vlgmr.msrb.gmra.mxu3 %v625_v54 }
 0x15c   :  { %v699_v58 = vpop.f32.mrf.mxu3 }
 0x15d   :  { %v704_v60 = vmax.f32 %v699_v58, 0.0 }
 0x164   :  { %v701_v59 = vpop.f32.mrf.mxu3 }
 0x165   :  { %v705_v61 = vmax.f32 %v701_v59, 0.0 }
 0x167   :  { %v706_v62 = vpack.c.bf16 %v705_v61, %v704_v60 }
 0x169   :  { %779 = vmatmul.bf16.vlgmr.msra.gmra.mxu0 %v706_v62 }
 0x1e6   :  { %v780_v1 = vpop.f32.mrf.mxu0 }
 0x1e7   :  { %v788_v2 = vsel %vm787_vm0, %v780_v1, -inf }
 0x1e8   :  { %790 = vmax.xlane.f32.xlu0 %v788_v2 }
 0x1ee   :  { %v782_v3 = vpop.f32.mrf.mxu0 }
 0x1ef   :  { %v789_v4 = vsel %vm787_vm0, %v782_v3, -inf }
 0x1f0   :  { %792 = vmax.xlane.f32.xlu0 %v789_v4 }
 0x25b   :  { %v791_v5 = vpop.xlane.xlu0 %790 }
 0x25c   :  { %v794_v6 = vsub.f32 %v788_v2, %v791_v5 }
 0x25e   :  { %v796_v7 = vmul.f32 1.442695, %v794_v6 }
 0x260   :  { %1215 = vpow2.f32 %v796_v7 }
 0x263   :  { %v793_v8 = vpop.xlane.xlu0 %792 }
 0x264   :  { %v795_v9 = vsub.f32 %v789_v4, %v793_v8 }
 0x266   :  { %v1216_v10 = vpop.eup %1215  ;;  %v798_v11 = vmul.f32 1.442695, %v795_v9 }
 0x267   :  { %800 = vadd.xlane.f32.xlu1 %v1216_v10 }
 0x268   :  { %1217 = vpow2.f32 %v798_v11 }
 0x26e   :  { %v1218_v12 = vpop.eup %1217 }
 0x26f   :  { %802 = vadd.xlane.f32.xlu1 %v1218_v12 }
 0x2da   :  { %v801_v13 = vpop.xlane.xlu1 %800 }
 0x2db   :  { %1219 = vlog2.f32 %v801_v13 }
 0x2e1   :  { %v1220_v14 = vpop.eup %1219 }
 0x2e2   :  { %v805_v15 = vmul.f32 0.6931472, %v1220_v14  ;;  %v803_v16 = vpop.xlane.xlu1 %802 }
 0x2e3   :  { %1221 = vlog2.f32 %v803_v16 }
 0x2e4   :  { %v808_v17 = vsub.f32 %v794_v6, %v805_v15 }
 0x2e6   :  { %810 = vst [vmem:[%s1380_s4] sm:$0xff] %v808_v17 }
 0x2e9   :  { %v1222_v18 = vpop.eup %1221 }
 0x2ea   :  { %v807_v19 = vmul.f32 0.6931472, %v1222_v18 }
 0x2ec   :  { %v809_v20 = vsub.f32 %v795_v9, %v807_v19 }
 0x2ee   :  { %811 = vst [vmem:[%s1380_s4 + $0x8] sm:$0xff] %v809_v20 }
 0x2ef   :  { %816 = vsyncpa [#allocation3], 1 }

</bundles_post_ra>
